<compile_context>
chip_gen: v7x
topology: tpu7x:2x2x1
jax: 0.10.0
libtpu: 0.0.40
codegen_flags: <defaults>
</compile_context>

<pallas_src>
import functools

import jax
import jax.numpy as jnp
import numpy as np
from jax.experimental import pallas as pl
from jax.experimental.pallas import tpu as pltpu


# ----------------------------------------------------------------------------
# Fused Pallas kernel: one grid step processes G graphs.
# ----------------------------------------------------------------------------
def gcn_encoder_kernel(x_ref, adj_ref, w_first_ref, w_blocks_ref, w_last_ref,
                       o_ref, *, num_blocks):
    G, N, F_in = x_ref.shape
    adj = adj_ref[...]                          # (G, N, N), resident for all layers

    def spmm(h3d):
        # Per-graph neighbor aggregation for all G graphs: one batched MXU matmul.
        return jnp.einsum("gij,gjf->gif", adj, h3d,
                          preferred_element_type=jnp.float32)

    def conv_relu(h3d, w, reassociate):
        g, n, f = h3d.shape
        o = w.shape[1]
        if reassociate:
            # relu(adj @ (h @ W)): cheaper when f > o (narrower N^2 contraction).
            hw = jnp.dot(h3d.reshape(g * n, f), w,
                         preferred_element_type=jnp.float32)
            z = spmm(hw.reshape(g, n, o)).reshape(g * n, o)
        else:
            # relu((adj @ h) @ W): single shared-weight matmul over all G*N rows.
            y = spmm(h3d).reshape(g * n, f)
            z = jnp.dot(y, w, preferred_element_type=jnp.float32)
        return jnp.maximum(z, 0.0).reshape(g, n, o)

    readouts = []
    w_first = w_first_ref[...]
    h = conv_relu(x_ref[...], w_first, reassociate=(F_in > w_first.shape[1]))
    readouts.append(jnp.max(h, axis=1))         # (G, H) node-max readout
    for i in range(num_blocks):                 # static unroll
        h = conv_relu(h, w_blocks_ref[i], reassociate=False)
        readouts.append(jnp.max(h, axis=1))     # (G, H)
    h = conv_relu(h, w_last_ref[...], reassociate=False)
    readouts.append(jnp.max(h, axis=1))         # (G, D)

    # Single lane-dense store of all L readouts for these G graphs: (G, L*D).
    o_ref[0] = jnp.concatenate(readouts, axis=-1).astype(o_ref.dtype)


# ----------------------------------------------------------------------------
# Wrapper helpers
# ----------------------------------------------------------------------------
def _graphs_per_step(B, N, target_rows=256, max_rows=2048):
    """Largest divisor G of B keeping >=2 grid steps (v7x megacore) and a
    VMEM-friendly G*N row count; prefer G*N >= target_rows for MXU fill."""
    best = 1
    for g in range(1, B + 1):
        if B % g:
            continue
        if B >= 2 and B // g < 2:
            continue
        if g * N > max_rows:
            continue
        best = g
        if g * N >= target_rows:
            break
    return best


def _vmem_limit_bytes(G, N, F_in, H, D, L, num_blocks):
    f32 = 4
    io_blocks = 2 * (G * N * N + G * N * F_in + G * L * D) * f32     # double-buffered
    weights = 2 * (F_in * H + max(num_blocks, 1) * H * H + H * D) * f32
    work = 8 * G * N * max(F_in, H, D) * f32                         # kernel temporaries
    need = io_blocks + weights + work + (4 << 20)
    return int(min(128 << 20, max(32 << 20, need)))


# ----------------------------------------------------------------------------
# Forward wrapper
# ----------------------------------------------------------------------------
def gcn_encoder_graph_forward(x, adj, params, *, num_layers):
    """x: (B, N, input_dim), adj: (B, N, N) -> (num_layers, B, output_dim)."""
    B, N, F_in = x.shape
    w_first = params["w_first"]        # (F_in, H)
    w_blocks = params["w_blocks"]      # (max(num_layers-2, 1), H, H)
    w_last = params["w_last"]          # (H, D)
    H = w_first.shape[1]
    D = w_last.shape[1]
    assert H == D, "torch.cat(out_all, dim=1) requires hidden_dim == output_dim"
    num_blocks = num_layers - 2
    L = num_layers

    G = _graphs_per_step(B, N)
    assert B % G == 0
    steps = B // G

    # Advisory cost estimate: two matmuls + readout per layer.
    layer_dims = [(F_in, H)] + [(H, H)] * num_blocks + [(H, D)]
    flops = sum(2 * B * N * N * f + 2 * B * N * f * o for f, o in layer_dims)
    bytes_accessed = 4 * (x.size + adj.size + w_first.size + w_blocks.size
                          + w_last.size + B * L * D)

    out = pl.pallas_call(
        functools.partial(gcn_encoder_kernel, num_blocks=num_blocks),
        out_shape=jax.ShapeDtypeStruct((steps, G, L * D), jnp.float32),
        grid=(steps,),
        in_specs=[
            pl.BlockSpec((G, N, F_in), lambda b: (b, 0, 0)),      # x (G graphs)
            pl.BlockSpec((G, N, N), lambda b: (b, 0, 0)),         # adj (G graphs)
            pl.BlockSpec(w_first.shape, lambda b: (0, 0)),        # resident weights
            pl.BlockSpec(w_blocks.shape, lambda b: (0, 0, 0)),    # resident weights
            pl.BlockSpec(w_last.shape, lambda b: (0, 0)),         # resident weights
        ],
        out_specs=pl.BlockSpec((1, G, L * D), lambda b: (b, 0, 0)),  # lane-dense
        compiler_params=pltpu.CompilerParams(
            dimension_semantics=("parallel",),
            vmem_limit_bytes=_vmem_limit_bytes(G, N, F_in, H, D, L, num_blocks),
        ),
        cost_estimate=pl.CostEstimate(flops=int(flops), transcendentals=0,
                                      bytes_accessed=int(bytes_accessed)),
    )(x, adj, w_first, w_blocks, w_last)

    # (steps, G, L*D) -> (B, L, D); torch's .permute(1, 0, 2) -> (L, B, D).
    out = out.reshape(B, L, D)
    return jnp.transpose(out, (1, 0, 2))


# ----------------------------------------------------------------------------
# Pure-JAX reference (mirrors the PyTorch forward)
# ----------------------------------------------------------------------------
def gcn_encoder_graph_ref(x, adj, params, *, num_layers):
    w_first, w_blocks, w_last = (params["w_first"], params["w_blocks"],
                                 params["w_last"])

    def conv_relu(h, w):
        y = jnp.einsum("bij,bjf->bif", adj, h)
        return jnp.maximum(y @ w, 0.0)

    outs = []
    h = conv_relu(x, w_first)
    outs.append(jnp.max(h, axis=1, keepdims=True))
    for i in range(num_layers - 2):
        h = conv_relu(h, w_blocks[i])
        outs.append(jnp.max(h, axis=1, keepdims=True))
    h = conv_relu(h, w_last)
    outs.append(jnp.max(h, axis=1, keepdims=True))
    out = jnp.concatenate(outs, axis=1)            # (B, L, D)
    return jnp.transpose(out, (1, 0, 2))           # (L, B, D)


# ----------------------------------------------------------------------------
# Deterministic synthetic params (xavier_uniform with ReLU gain, as in spec)
# ----------------------------------------------------------------------------
def make_params(key, input_dim, hidden_dim, output_dim, num_layers):
    assert hidden_dim == output_dim, "GCN_encoder_graph concat requires equal dims"
    num_blocks = max(num_layers - 2, 0)
    ks = jax.random.split(key, 3)

    def xavier(k, shape):
        gain = np.sqrt(2.0)  # calculate_gain('relu')
        bound = gain * np.sqrt(6.0 / (shape[-2] + shape[-1]))
        return jax.random.uniform(k, shape, jnp.float32, -bound, bound)

    return {
        "w_first": xavier(ks[0], (input_dim, hidden_dim)),
        # only the first (num_layers - 2) blocks are used by forward()
        "w_blocks": xavier(ks[1], (max(num_blocks, 1), hidden_dim, hidden_dim)),
        "w_last": xavier(ks[2], (hidden_dim, output_dim)),
    }


# ----------------------------------------------------------------------------
if __name__ == "__main__":
    root = jax.random.PRNGKey(0)

    def run_case(case_key, B, N, input_dim, hidden_dim, output_dim, num_layers):
        kx, ka, kp = jax.random.split(case_key, 3)
        x = jax.random.normal(kx, (B, N, input_dim), jnp.float32)
        a = jax.random.uniform(ka, (B, N, N), jnp.float32)
        adj = a / jnp.sum(a, axis=-1, keepdims=True)   # row-normalized adjacency
        params = make_params(kp, input_dim, hidden_dim, output_dim, num_layers)

        out = gcn_encoder_graph_forward(x, adj, params, num_layers=num_layers)
        out = jax.block_until_ready(out)
        assert out.shape == (num_layers, B, output_dim)

        ref = gcn_encoder_graph_ref(x, adj, params, num_layers=num_layers)
        np.testing.assert_allclose(np.asarray(out), np.asarray(ref),
                                   rtol=1e-3, atol=1e-3)

    k1, k2 = jax.random.split(root)
    # Main case: multi-graph grid steps (G=4, 2 grid steps), 4 layers.
    run_case(k1, B=8, N=16, input_dim=16, hidden_dim=32, output_dim=32,
             num_layers=4)
    # Edge case: num_layers=2 (no block layers) + first-layer reassociation
    # (input_dim > hidden_dim).
    run_case(k2, B=2, N=16, input_dim=48, hidden_dim=32, output_dim=32,
             num_layers=2)

    print("KERNEL_OK")
</pallas_src>

<mosaic_0001>
module attributes {stable_mosaic.version = 11 : i64} {
  func.func @gcn_encoder_kernel(%arg0: i32, %arg1: memref<4x16x16xf32, #tpu.memory_space<vmem>>, %arg2: memref<4x16x16xf32, #tpu.memory_space<vmem>>, %arg3: memref<16x32xf32, #tpu.memory_space<vmem>>, %arg4: memref<2x32x32xf32, #tpu.memory_space<vmem>>, %arg5: memref<32x32xf32, #tpu.memory_space<vmem>>, %arg6: memref<1x4x128xf32, #tpu.memory_space<vmem>>) attributes {dimension_semantics = [#tpu.dimension_semantics<parallel>], iteration_bounds = array<i64: 2>, scalar_prefetch = 0 : i64, scratch_operands = 0 : i64, tpu.core_type = #tpu.core_type<tc>, window_params = [{transform_indices = @transform_0, window_bounds = array<i64: 4, 16, 16>}, {transform_indices = @transform_1, window_bounds = array<i64: 4, 16, 16>}, {pipeline_mode = #tpu.pipeline_mode<synchronous>, transform_indices = @transform_2, window_bounds = array<i64: 16, 32>}, {pipeline_mode = #tpu.pipeline_mode<synchronous>, transform_indices = @transform_3, window_bounds = array<i64: 2, 32, 32>}, {pipeline_mode = #tpu.pipeline_mode<synchronous>, transform_indices = @transform_4, window_bounds = array<i64: 32, 32>}, {transform_indices = @transform_5, window_bounds = array<i64: 1, 4, 128>}]} {
    %c0 = arith.constant 0 : index
    %c0_0 = arith.constant 0 : index
    %c0_1 = arith.constant 0 : index
    %0 = vector.load %arg2[%c0, %c0_0, %c0_1] : memref<4x16x16xf32, #tpu.memory_space<vmem>>, vector<4x16x16xf32>
    %c0_2 = arith.constant 0 : index
    %c0_3 = arith.constant 0 : index
    %1 = vector.load %arg3[%c0_2, %c0_3] : memref<16x32xf32, #tpu.memory_space<vmem>>, vector<16x32xf32>
    %c0_4 = arith.constant 0 : index
    %c0_5 = arith.constant 0 : index
    %c0_6 = arith.constant 0 : index
    %2 = vector.load %arg1[%c0_4, %c0_5, %c0_6] : memref<4x16x16xf32, #tpu.memory_space<vmem>>, vector<4x16x16xf32>
    "tpu.trace_start"() <{level = 10 : i32, message = "gij,gjf->gif"}> : () -> ()
    %cst = arith.constant dense<0.000000e+00> : vector<4x16x16xf32>
    %3 = tpu.matmul %0, %2, %cst {dimension_numbers = #tpu.dot_dimension_numbers<[2], [1], [1], [2], [0, 0, 0, 1, 1, 2], [0], [0]>} : vector<4x16x16xf32>, vector<4x16x16xf32>, vector<4x16x16xf32> -> vector<4x16x16xf32>
    "tpu.trace_stop"() : () -> ()
    %4 = vector.shape_cast %3 : vector<4x16x16xf32> to vector<64x16xf32>
    %cst_7 = arith.constant dense<0.000000e+00> : vector<64x32xf32>
    %5 = tpu.matmul %4, %1, %cst_7 {dimension_numbers = #tpu.dot_dimension_numbers<[1], [0], [0], [1], [0, 0, 1, 1], [], []>} : vector<64x16xf32>, vector<16x32xf32>, vector<64x32xf32> -> vector<64x32xf32>
    %cst_8 = arith.constant 0.000000e+00 : f32
    %6 = vector.broadcast %cst_8 : f32 to vector<64x32xf32>
    %7 = arith.maximumf %5, %6 : vector<64x32xf32>
    %8 = vector.shape_cast %7 : vector<64x32xf32> to vector<4x16x32xf32>
    %cst_9 = arith.constant dense<0xFF800000> : vector<4x32xf32>
    %9 = vector.multi_reduction <maximumf>, %8, %cst_9 [1] : vector<4x16x32xf32> to vector<4x32xf32>
    %c0_10 = arith.constant 0 : index
    %c0_11 = arith.constant 0 : index
    %c0_12 = arith.constant 0 : index
    %10 = vector.load %arg4[%c0_10, %c0_11, %c0_12] : memref<2x32x32xf32, #tpu.memory_space<vmem>>, vector<1x32x32xf32>
    %11 = vector.shape_cast %10 : vector<1x32x32xf32> to vector<32x32xf32>
    "tpu.trace_start"() <{level = 10 : i32, message = "gij,gjf->gif"}> : () -> ()
    %cst_13 = arith.constant dense<0.000000e+00> : vector<4x16x32xf32>
    %12 = tpu.matmul %0, %8, %cst_13 {dimension_numbers = #tpu.dot_dimension_numbers<[2], [1], [1], [2], [0, 0, 0, 1, 1, 2], [0], [0]>} : vector<4x16x16xf32>, vector<4x16x32xf32>, vector<4x16x32xf32> -> vector<4x16x32xf32>
    "tpu.trace_stop"() : () -> ()
    %13 = vector.shape_cast %12 : vector<4x16x32xf32> to vector<64x32xf32>
    %cst_14 = arith.constant dense<0.000000e+00> : vector<64x32xf32>
    %14 = tpu.matmul %13, %11, %cst_14 {dimension_numbers = #tpu.dot_dimension_numbers<[1], [0], [0], [1], [0, 0, 1, 1], [], []>} : vector<64x32xf32>, vector<32x32xf32>, vector<64x32xf32> -> vector<64x32xf32>
    %cst_15 = arith.constant 0.000000e+00 : f32
    %15 = vector.broadcast %cst_15 : f32 to vector<64x32xf32>
    %16 = arith.maximumf %14, %15 : vector<64x32xf32>
    %17 = vector.shape_cast %16 : vector<64x32xf32> to vector<4x16x32xf32>
    %cst_16 = arith.constant dense<0xFF800000> : vector<4x32xf32>
    %18 = vector.multi_reduction <maximumf>, %17, %cst_16 [1] : vector<4x16x32xf32> to vector<4x32xf32>
    %c1 = arith.constant 1 : index
    %c0_17 = arith.constant 0 : index
    %c0_18 = arith.constant 0 : index
    %19 = vector.load %arg4[%c1, %c0_17, %c0_18] : memref<2x32x32xf32, #tpu.memory_space<vmem>>, vector<1x32x32xf32>
    %20 = vector.shape_cast %19 : vector<1x32x32xf32> to vector<32x32xf32>
    "tpu.trace_start"() <{level = 10 : i32, message = "gij,gjf->gif"}> : () -> ()
    %cst_19 = arith.constant dense<0.000000e+00> : vector<4x16x32xf32>
    %21 = tpu.matmul %0, %17, %cst_19 {dimension_numbers = #tpu.dot_dimension_numbers<[2], [1], [1], [2], [0, 0, 0, 1, 1, 2], [0], [0]>} : vector<4x16x16xf32>, vector<4x16x32xf32>, vector<4x16x32xf32> -> vector<4x16x32xf32>
    "tpu.trace_stop"() : () -> ()
    %22 = vector.shape_cast %21 : vector<4x16x32xf32> to vector<64x32xf32>
    %cst_20 = arith.constant dense<0.000000e+00> : vector<64x32xf32>
    %23 = tpu.matmul %22, %20, %cst_20 {dimension_numbers = #tpu.dot_dimension_numbers<[1], [0], [0], [1], [0, 0, 1, 1], [], []>} : vector<64x32xf32>, vector<32x32xf32>, vector<64x32xf32> -> vector<64x32xf32>
    %cst_21 = arith.constant 0.000000e+00 : f32
    %24 = vector.broadcast %cst_21 : f32 to vector<64x32xf32>
    %25 = arith.maximumf %23, %24 : vector<64x32xf32>
    %26 = vector.shape_cast %25 : vector<64x32xf32> to vector<4x16x32xf32>
    %cst_22 = arith.constant dense<0xFF800000> : vector<4x32xf32>
    %27 = vector.multi_reduction <maximumf>, %26, %cst_22 [1] : vector<4x16x32xf32> to vector<4x32xf32>
    %c0_23 = arith.constant 0 : index
    %c0_24 = arith.constant 0 : index
    %28 = vector.load %arg5[%c0_23, %c0_24] : memref<32x32xf32, #tpu.memory_space<vmem>>, vector<32x32xf32>
    "tpu.trace_start"() <{level = 10 : i32, message = "gij,gjf->gif"}> : () -> ()
    %cst_25 = arith.constant dense<0.000000e+00> : vector<4x16x32xf32>
    %29 = tpu.matmul %0, %26, %cst_25 {dimension_numbers = #tpu.dot_dimension_numbers<[2], [1], [1], [2], [0, 0, 0, 1, 1, 2], [0], [0]>} : vector<4x16x16xf32>, vector<4x16x32xf32>, vector<4x16x32xf32> -> vector<4x16x32xf32>
    "tpu.trace_stop"() : () -> ()
    %30 = vector.shape_cast %29 : vector<4x16x32xf32> to vector<64x32xf32>
    %cst_26 = arith.constant dense<0.000000e+00> : vector<64x32xf32>
    %31 = tpu.matmul %30, %28, %cst_26 {dimension_numbers = #tpu.dot_dimension_numbers<[1], [0], [0], [1], [0, 0, 1, 1], [], []>} : vector<64x32xf32>, vector<32x32xf32>, vector<64x32xf32> -> vector<64x32xf32>
    %cst_27 = arith.constant 0.000000e+00 : f32
    %32 = vector.broadcast %cst_27 : f32 to vector<64x32xf32>
    %33 = arith.maximumf %31, %32 : vector<64x32xf32>
    %34 = vector.shape_cast %33 : vector<64x32xf32> to vector<4x16x32xf32>
    %cst_28 = arith.constant dense<0xFF800000> : vector<4x32xf32>
    %35 = vector.multi_reduction <maximumf>, %34, %cst_28 [1] : vector<4x16x32xf32> to vector<4x32xf32>
    %36 = tpu.concatenate %9, %18, %27, %35 in 1 : vector<4x32xf32>, vector<4x32xf32>, vector<4x32xf32>, vector<4x32xf32> -> vector<4x128xf32>
    %c0_29 = arith.constant 0 : index
    %c0_30 = arith.constant 0 : index
    %c0_31 = arith.constant 0 : index
    %37 = vector.load %arg6[%c0_29, %c0_30, %c0_31] : memref<1x4x128xf32, #tpu.memory_space<vmem>>, vector<1x4x128xf32>
    %38 = vector.shape_cast %37 : vector<1x4x128xf32> to vector<4x128xf32>
    %39 = vector.shape_cast %36 : vector<4x128xf32> to vector<1x4x128xf32>
    tpu.vector_store %arg6[%c0_29, %c0_30, %c0_31], %39 {strides = array<i32>} : memref<1x4x128xf32, #tpu.memory_space<vmem>>, vector<1x4x128xf32>,
    return
  }
  func.func @transform_0(%arg0: i32) -> (i32, i32, i32) {
    %c0_i32 = arith.constant 0 : i32
    %c0_i32_0 = arith.constant 0 : i32
    %c0_i32_1 = arith.constant 0 : i32
    return %arg0, %c0_i32, %c0_i32_0 : i32, i32, i32
  }
  func.func @transform_1(%arg0: i32) -> (i32, i32, i32) {
    %c0_i32 = arith.constant 0 : i32
    %c0_i32_0 = arith.constant 0 : i32
    %c0_i32_1 = arith.constant 0 : i32
    return %arg0, %c0_i32, %c0_i32_0 : i32, i32, i32
  }
  func.func @transform_2(%arg0: i32) -> (i32, i32) {
    %c0_i32 = arith.constant 0 : i32
    %c0_i32_0 = arith.constant 0 : i32
    %c0_i32_1 = arith.constant 0 : i32
    return %c0_i32, %c0_i32_0 : i32, i32
  }
  func.func @transform_3(%arg0: i32) -> (i32, i32, i32) {
    %c0_i32 = arith.constant 0 : i32
    %c0_i32_0 = arith.constant 0 : i32
    %c0_i32_1 = arith.constant 0 : i32
    %c0_i32_2 = arith.constant 0 : i32
    return %c0_i32, %c0_i32_0, %c0_i32_1 : i32, i32, i32
  }
  func.func @transform_4(%arg0: i32) -> (i32, i32) {
    %c0_i32 = arith.constant 0 : i32
    %c0_i32_0 = arith.constant 0 : i32
    %c0_i32_1 = arith.constant 0 : i32
    return %c0_i32, %c0_i32_0 : i32, i32
  }
  func.func @transform_5(%arg0: i32) -> (i32, i32, i32) {
    %c0_i32 = arith.constant 0 : i32
    %c0_i32_0 = arith.constant 0 : i32
    %c0_i32_1 = arith.constant 0 : i32
    return %arg0, %c0_i32, %c0_i32_0 : i32, i32, i32
  }
}

</mosaic_0001>

<bundles_post_ra>
// kernel: tpu_custom_call.1
= control target key start
LH: loop header
LB: loop body
LE: loop exit
PB: predicated region body
PF: predicated region fallthrough
CT: control target
= control target key end

     0   :  { %s3794_s0 = inlined_call_operand.hbm [shape: f32[8,16,16], index: 0, kind: input, shape index: {}]   ;;  %s3795_s1 = inlined_call_operand.hbm [shape: f32[8,16,16], index: 1, kind: input, shape index: {}]   ;;  %s3796_s2 = inlined_call_operand.hbm [shape: f32[16,32], index: 2, kind: input, shape index: {}]   ;;  %s3797_s3 = inlined_call_operand.hbm [shape: f32[2,32,32], index: 3, kind: input, shape index: {}]   ;;  %s3798_s4 = inlined_call_operand.hbm [shape: f32[32,32], index: 4, kind: input, shape index: {}]   ;;  %s3799_s5 = inlined_call_operand.hbm [shape: f32[2,4,128], index: 5, kind: output, shape index: {}]  }
   0x1   :  { %3807 = sst [smem:[#allocation17_spill]] %s3794_s0 }
   0x2   :  { %3808 = sst [smem:[#allocation18_spill]] %s3796_s2 }
   0x3   :  { %3809 = sst [smem:[#allocation19_spill]] %s3797_s3 }
   0x4   :  { %3810 = sst [smem:[#allocation20_spill]] %s3798_s4 }
   0x5   :  { %10 = vsyncpa [#allocation3], 0 }
   0x6   :  { %12 = vsyncpa [#allocation3 + $0x1], 0 }
   0x7   :  { %13 = vsyncpa [#allocation6], 0 }
   0x8   :  { %15 = vsyncpa [#allocation6 + $0x1], 0 }
   0x9   :  { %16 = vsyncpa [#allocation9], 0 }
   0xa   :  { %17 = vsyncpa [#allocation4], 0 }
   0xb   :  { %19 = vsyncpa [#allocation4 + $0x1], 0  ;;  %s3298_s18 = smov 0   ;;  %s3300_s19 = smov 0  }
   0xc   :  { %s3302_s20 = smov 0   ;;  %s3304_s21 = smov 0  }
   0xd LB: > { %s3319_s22 = sadd.s32 4294967295, %s3255_s21   ;;  %s2461_s23 = sadd.s32 4294967294, %s3255_s21   ;;  %s3255_s21 = sphi %s3304_s21, %s3836_s21   ;;  %s3251_s20 = sphi %s3302_s20, %s3835_s20   ;;  %s3247_s19 = sphi %s3300_s19, %s3834_s19   ;;  %s3243_s18 = sphi %s3298_s18, %s3833_s18  }
   0xe   : > { %p45_p0 = scmp.ne.s32.totalorder %s3247_s19, %s3243_s18  ;;  %p3800_p1 = scmp.eq.s32.totalorder %s3319_s22, 0 }
   0xf   : > { %p164_p3 = scmp.eq.s32.totalorder %s2461_s23, 1  ;;  %p2462_p5 = scmp.ge.s32.totalorder %s3255_s21, 1 }
  0x10   : > { %p3328_p4 = por %p3800_p1, %p45_p0  ;;  %p171_p7 = scmp.lt.s32.totalorder %s3255_s21, 3 }
  0x11   : > { %p3333_p6 = por %p164_p3, %p45_p0  ;;  %s3257_s27 = smov [#allocation7]  }
  0x12   : > { %s3811_s24 = scalar_select %p3328_p4, 1, 0 }
  0x13   : > { %s3812_s25 = scalar_select %p3333_p6, 1, 0 }
  0x14   : > { %p3338_p8 = pnand %p2462_p5, %p171_p7  ;;  %s183_s28 = sshll.u32 %s3257_s27, 4  ;;  %s3342_s28 = int_to_ptr.vmem [resolvable:$true] %s183_s28 }
  0x15   : > { %s3258_s30 = smov [#allocation8]   ;;  %s3259_s7 = smov [#allocation10]  }
  0x16   : > { %s3813_s26 = scalar_select %p3338_p8, 1, 0 }
  0x17   : > { %p2964_p9 = pneg %p3338_p8  ;;  %s196_s6 = sshll.u32 %s3258_s30, 4  ;;  %s3353_s6 = int_to_ptr.vmem [resolvable:$true] %s196_s6 }
  0x18   : > { %s3355_s8 = sshll.u32 %s3259_s7, 4  ;;  %s3815_s2 = sld [smem:[#allocation18_spill]]  ;;  %s210_s8 = int_to_ptr.vmem [resolvable:$true] %s3355_s8 }
  0x19   : > { %p3349_p11 = pnand %p2964_p9, %p3800_p1 }
  0x1b   : > { %p3365_p13 = pneg %p3349_p11 }
  0x1e   : > { %s3033_s11 = scalar_lea.hbm %s3815_s2, 256 }
  0x1f   : > { %p3034_p12 = scmp.ne.s32.totalorder %s3815_s2, %s3033_s11  ;;  %p3040_p5 = scmp.lt.u32.totalorder %s3033_s11, %s3815_s2 }
  0x21   : > { %p3036_p0 = pnand %p3365_p13, %p3034_p12 }
  0x23   : > { %p3037_p3 = pneg %p3036_p0 }
  0x25   : > { %p3042_p7 = pnand %p3040_p5, %p3037_p3 }
  0x27   : > { %3045 = shalt.err (!%p3042_p7)
}
  0x28   : > { %s3046_s17 = scalar_lea.vmem %s3342_s28, 256  ;;  %p3054_p2 = scmp.lt.s32.totalorder %s3342_s28, %s3342_s28 }
  0x29   : > { %p3047_p9 = scmp.ne.s32.totalorder %s3342_s28, %s3046_s17  ;;  %p3055_p6 = scmp.lt.s32.totalorder %s3046_s17, %s3046_s17 }
  0x2b   : > { %p3049_p10 = pnand %p3047_p9, %p3365_p13  ;;  %p3056_p12 = por %p3055_p6, %p3054_p2 }
  0x2d   : > { %p3050_p1 = pneg %p3049_p10 }
  0x2f   : > { %p3057_p0 = pnand %p3056_p12, %p3050_p1 }
  0x31   : > { %3060 = shalt.err (!%p3057_p0)
}
  0x32   : > { %s3803_s23 = smov 128   ;;  %s3805_s27 = smov 8  }
  0x33   : > { %2967 = dma.hbm_to_vmem [thread:$0]  (!%p3349_p11), %s3815_s2, 256, %s3342_s28, [#allocation6], %s3803_s23, %s3803_s23, %s3805_s27  }
  0x34   : > { %s3817_s3 = sld [smem:[#allocation19_spill]] }
  0x3a   : > { %s3061_s11 = scalar_lea.hbm %s3817_s3, 1024 }
  0x3b   : > { %p3062_p1 = scmp.ne.s32.totalorder %s3817_s3, %s3061_s11  ;;  %p3068_p10 = scmp.lt.u32.totalorder %s3061_s11, %s3817_s3 }
  0x3d   : > { %p3064_p2 = pnand %p3062_p1, %p3365_p13 }
  0x3f   : > { %p3065_p6 = pneg %p3064_p2 }
  0x41   : > { %p3070_p3 = pnand %p3068_p10, %p3065_p6 }
  0x43   : > { %3073 = shalt.err (!%p3070_p3)
}
  0x44   : > { %s3074_s28 = scalar_lea.vmem %s3353_s6, 1024  ;;  %p3082_p12 = scmp.lt.s32.totalorder %s3353_s6, %s3353_s6 }
  0x45   : > { %p3075_p5 = scmp.ne.s32.totalorder %s3353_s6, %s3074_s28  ;;  %p3083_p0 = scmp.lt.s32.totalorder %s3074_s28, %s3074_s28 }
  0x47   : > { %p3077_p7 = pnand %p3075_p5, %p3365_p13  ;;  %p3084_p1 = por %p3083_p0, %p3082_p12 }
  0x49   : > { %p3078_p9 = pneg %p3077_p7 }
  0x4b   : > { %p3085_p2 = pnand %p3084_p1, %p3078_p9 }
  0x4d   : > { %3088 = shalt.err (!%p3085_p2)
}
  0x4e   : > { %2970 = dma.hbm_to_vmem [thread:$0]  (!%p3349_p11), %s3817_s3, 1024, %s3353_s6, [#allocation9], %s3803_s23, %s3803_s23, %s3805_s27  }
  0x4f   : > { %s3818_s4 = sld [smem:[#allocation20_spill]] }
  0x55   : > { %s3089_s10 = scalar_lea.hbm %s3818_s4, 512 }
  0x56   : > { %p3090_p6 = scmp.ne.s32.totalorder %s3818_s4, %s3089_s10  ;;  %p3096_p5 = scmp.lt.u32.totalorder %s3089_s10, %s3818_s4 }
  0x58   : > { %p3092_p10 = pnand %p3090_p6, %p3365_p13 }
  0x5a   : > { %p3093_p3 = pneg %p3092_p10 }
  0x5c   : > { %p3098_p7 = pnand %p3096_p5, %p3093_p3 }
  0x5e   : > { %3101 = shalt.err (!%p3098_p7)
}
  0x5f   : > { %s3102_s16 = scalar_lea.vmem %s210_s8, 512  ;;  %p3110_p1 = scmp.lt.s32.totalorder %s210_s8, %s210_s8 }
  0x60   : > { %p3103_p9 = scmp.ne.s32.totalorder %s210_s8, %s3102_s16  ;;  %p3111_p2 = scmp.lt.s32.totalorder %s3102_s16, %s3102_s16 }
  0x62   : > { %p3105_p12 = pnand %p3103_p9, %p3365_p13  ;;  %p3112_p4 = por %p3111_p2, %p3110_p1 }
  0x64   : > { %p3106_p0 = pneg %p3105_p12 }
  0x66   : > { %p3113_p8 = pnand %p3112_p4, %p3106_p0 }
  0x68   : > { %3116 = shalt.err (!%p3113_p8)
}
  0x69   : > { %2973 = dma.hbm_to_vmem [thread:$0]  (!%p3349_p11), %s3818_s4, 512, %s210_s8, [#allocation9], %s3803_s23, %s3803_s23, %s3805_s27  }
  0x6a   : > { %s3438_s14 = sadd.s32 1, %s3255_s21   ;;  %s32_s17 = sadd.s32 1, %s3251_s20 }
  0x6b   : > { %s29_s29 = ssub.s32 %s3255_s21, %s3438_s14  ;;  %p39_p8 = scmp.ne.s32.totalorder %s3251_s20, %s3247_s19 }
  0x6c   : > { %p30_p4 = scmp.eq.s32.totalorder %s29_s29, 0  ;;  %p40_p13 = scmp.eq.s32.totalorder %s3255_s21, 0 }
  0x6d   : > { %p2988_p6 = scmp.lt.s32.totalorder %s3255_s21, 2  ;;  %p3819_p3 = scmp.eq.s32.totalorder %s3319_s22, 1 }
  0x6e   : > { %s3448_s30 = scalar_select %p30_p4, %s3251_s20, %s32_s17  }
  0x6f   : > { %p41_p10 = por %p40_p13, %p39_p8  ;;  %p3452_p5 = por %p3819_p3, %p39_p8 }
  0x70   : > { %s223_s9 = sand.u32 1, %s3251_s20   ;;  %s2551_s10 = sshll.u32 %s3255_s21, 10 }
  0x71   : > { %s3458_s8 = sshll.u32 %s223_s9, 6  ;;  %s3821_s0 = sld [smem:[#allocation17_spill]] }
  0x72   : > { %s227_s15 = scalar_lea.vmem [#allocation2], %s3458_s8  ;;  %p3466_p11 = pnand %p2988_p6, %p41_p10 }
  0x73   : > { %s235_s16 = sshll.u32 %s227_s15, 4  ;;  %s3475_s17 = scalar_lea.hbm %s3795_s1, %s2551_s10  ;;  %s3470_s16 = int_to_ptr.vmem [resolvable:$true] %s235_s16 }
  0x74   : > { %s3477_s11 = scalar_lea.sflag [#allocation3], %s223_s9  ;;  %p3119_p9 = pneg %p3466_p11 }
  0x77   : > { %s3463_s13 = scalar_lea.hbm %s3821_s0, %s2551_s10  ;;  %s3122_s27 = scalar_lea.hbm %s3821_s0, 2048 }
  0x78   : > { %s3117_s12 = scalar_lea.hbm %s3463_s13, 1024  ;;  %p3123_p1 = scmp.lt.u32.totalorder %s3463_s13, %s3821_s0 }
  0x79   : > { %p3118_p7 = scmp.ne.s32.totalorder %s3463_s13, %s3117_s12  ;;  %p3124_p2 = scmp.lt.u32.totalorder %s3122_s27, %s3117_s12 }
  0x7a   : > { %p3126_p8 = scmp.lt.u32.totalorder %s3117_s12, %s3463_s13 }
  0x7b   : > { %p3120_p12 = pnand %p3119_p9, %p3118_p7  ;;  %p3125_p4 = por %p3124_p2, %p3123_p1 }
  0x7d   : > { %p3121_p0 = pneg %p3120_p12  ;;  %p3127_p13 = por %p3126_p8, %p3125_p4 }
  0x7f   : > { %p3128_p6 = pnand %p3127_p13, %p3121_p0 }
  0x81   : > { %3131 = shalt.err (!%p3128_p6)
}
  0x82   : > { %s3132_s9 = scalar_lea.vmem %s3470_s16, 1024  ;;  %s3262_s23 = smov [#allocation2]  }
  0x83   : > { %p3133_p10 = scmp.ne.s32.totalorder %s3470_s16, %s3132_s9  ;;  %s3137_s10 = sshll.u32 %s3262_s23, 4  ;;  %s3138_s10 = int_to_ptr.vmem [resolvable:$false] %s3137_s10 }
  0x84   : > { %s3139_s2 = scalar_lea.vmem %s3138_s10, 2048  ;;  %p3140_p12 = scmp.lt.s32.totalorder %s3470_s16, %s3138_s10 }
  0x85   : > { %p3135_p3 = pnand %p3133_p10, %p3119_p9  ;;  %p3141_p1 = scmp.lt.s32.totalorder %s3139_s2, %s3132_s9 }
  0x87   : > { %p3136_p7 = pneg %p3135_p3  ;;  %p3142_p2 = por %p3141_p1, %p3140_p12 }
  0x89   : > { %p3143_p4 = pnand %p3142_p2, %p3136_p7 }
  0x8b   : > { %3146 = shalt.err (!%p3143_p4)
}
  0x8c   : > { %s3823_s3 = smov 8   ;;  %s3824_s27 = smov 128  }
  0x8d   : > { %2977 = dma.hbm_to_vmem [thread:$0]  (!%p3466_p11), %s3463_s13, 1024, %s3470_s16, %s3477_s11, %s3824_s27, %s3824_s27, %s3823_s3  }
  0x8e   : > { %s249_s28 = scalar_lea.vmem [#allocation5], %s3458_s8  ;;  %s245_s12 = sand.u32 1, %s3255_s21  }
  0x8f   : > { %s257_s29 = sshll.u32 %s249_s28, 4  ;;  %s3512_s15 = scalar_lea.sflag [#allocation6], %s245_s12  ;;  %s3510_s29 = int_to_ptr.vmem [resolvable:$true] %s257_s29 }
  0x90   : > { %s3147_s9 = scalar_lea.hbm %s3475_s17, 1024  ;;  %s3152_s2 = scalar_lea.hbm %s3795_s1, 2048 }
  0x91   : > { %p3148_p0 = scmp.ne.s32.totalorder %s3475_s17, %s3147_s9  ;;  %p3153_p6 = scmp.lt.u32.totalorder %s3475_s17, %s3795_s1 }
  0x92   : > { %p3154_p10 = scmp.lt.u32.totalorder %s3152_s2, %s3147_s9  ;;  %p3156_p7 = scmp.lt.u32.totalorder %s3147_s9, %s3475_s17 }
  0x93   : > { %p3150_p8 = pnand %p3148_p0, %p3119_p9 }
  0x94   : > { %p3155_p3 = por %p3154_p10, %p3153_p6 }
  0x95   : > { %p3151_p13 = pneg %p3150_p8 }
  0x96   : > { %p3157_p12 = por %p3156_p7, %p3155_p3 }
  0x98   : > { %p3158_p1 = pnand %p3157_p12, %p3151_p13 }
  0x9a   : > { %3161 = shalt.err (!%p3158_p1)
}
  0x9b   : > { %s3162_s8 = scalar_lea.vmem %s3510_s29, 1024  ;;  %s3263_s13 = smov [#allocation5]  }
  0x9c   : > { %p3163_p2 = scmp.ne.s32.totalorder %s3510_s29, %s3162_s8  ;;  %s3167_s16 = sshll.u32 %s3263_s13, 4  ;;  %s3168_s16 = int_to_ptr.vmem [resolvable:$false] %s3167_s16 }
  0x9d   : > { %s3169_s0 = scalar_lea.vmem %s3168_s16, 2048  ;;  %p3170_p8 = scmp.lt.s32.totalorder %s3510_s29, %s3168_s16 }
  0x9e   : > { %p3165_p4 = pnand %p3163_p2, %p3119_p9  ;;  %p3171_p6 = scmp.lt.s32.totalorder %s3169_s0, %s3162_s8 }
  0xa0   : > { %p3166_p0 = pneg %p3165_p4  ;;  %p3172_p10 = por %p3171_p6, %p3170_p8 }
  0xa2   : > { %p3173_p3 = pnand %p3172_p10, %p3166_p0 }
  0xa4   : > { %3176 = shalt.err (!%p3173_p3)
}
  0xa5   : > { %2980 = dma.hbm_to_vmem [thread:$0]  (!%p3466_p11), %s3475_s17, 1024, %s3510_s29, %s3512_s15, %s3824_s27, %s3824_s27, %s3823_s3  }
  0xa6   : > { %p3825_p9 = scmp.ne.s32.totalorder %s3813_s26, 0 }
  0xa7   : > { %s3544_s4 = sand.u32 (!%p3825_p9), 1, %s3247_s19   ;;  %p3826_p13 = scmp.ne.s32.totalorder (!%p3825_p9), %s3811_s24, 0 }
  0xa8   : > { %269 = sbr.rel (%p3825_p9) target bundleno = 2085 (0x825), region = 40  ;;  %s2476_s11 = sshll.u32 (!%p3825_p9), %s3544_s4, 6 }
  0xa9   : > { %s272_s28 = scalar_lea.sflag (!%p3825_p9), [#allocation3], %s3544_s4  ;;  %s3548_s12 = scalar_lea.vmem (!%p3825_p9), [#allocation2], %s2476_s11 }
  0xaf   : > { %3222 = dma.done.wait (%p3826_p13), %s272_s28, 1024  }
  0xb0   : > { %3224 = vsyncadd (%p3826_p13), %s272_s28, 4294966272  ;;  %s280_s6 = sand.u32 1, %s3319_s22   ;;  %s3555_s17 = scalar_lea.vmem [#allocation5], %s2476_s11 }
  0xb1   : > { %s281_s26 = scalar_lea.sflag [#allocation6], %s280_s6 }
  0xb2   : > { %3226 = dma.done.wait (%p3826_p13), %s281_s26, 1024  }
  0xb3   : > { %3228 = vsyncadd (%p3826_p13), %s281_s26, 4294966272  ;;  %p3827_p11 = scmp.eq.s32.totalorder %s3319_s22, 0 }
  0xb5   : > { %3230 = dma.done.wait (%p3827_p11), [#allocation6], 256   ;;  %p3828_p7 = pmov %p3827_p11 }
  0xb7   : > { %3232 = vsyncadd (%p3828_p7), [#allocation6], 4294967040  ;;  %p3829_p12 = pmov %p3828_p7 }
  0xb8   : > { %p3830_p1 = pmov %p3828_p7 }
  0xb9   : > { %3234 = dma.done.wait (%p3829_p12), [#allocation9], 1536  }
  0xba   : > { %3236 = vsyncadd (%p3830_p1), [#allocation9], 4294965760  ;;  %vm348_vm0 = vcmask 130048   ;;  %v340_v0 = vld [vmem:[%s3548_s12] sm:$0xff]  ;;  %v341_v1 = vld [vmem:[%s3548_s12 + $0x8] sm:$0xff]  ;;  %vm810_vm1 = vcmask 261120  }
  0xbb   : > { %v3572_v2 = vld [vmem:[%s3555_s17] sm:$0xff]  ;;  %v2852_v3 = vpack.c.bf16 %v341_v1, %v340_v0  ;;  %v342_v4 = vld [vmem:[%s3548_s12 + $0x10] sm:$0xff]  ;;  %v343_v5 = vld [vmem:[%s3548_s12 + $0x18] sm:$0xff]  ;;  %vm2283_vm2 = vcmask 1041409   ;;  %vm2285_vm3 = vcmask 1042434   ;;  %vm2287_vm4 = vcmask 1043459  }
  0xbc   : > { %2668 = vmatprep.mubr.msk.f32.mxu0 %vm348_vm0, %v3572_v2  ;;  %v2856_v6 = vpack.c.bf16 %v343_v5, %v342_v4  ;;  %v344_v7 = vld [vmem:[%s3548_s12 + $0x20] sm:$0xff]  ;;  %v345_v8 = vld [vmem:[%s3548_s12 + $0x28] sm:$0xff]  ;;  %v3581_v9 = vld [vmem:[%s3555_s17 + $0x10] sm:$0xff]  ;;  %s3264_s24 = smov 32   ;;  %s3265_s3 = smov 64   ;;  %vm2321_vm5 = vcmask 523264  }
  0xbd   : > { %2853 = vmatprep.subr.bf16.mxu0 %v2852_v3  ;;  %v2860_v10 = vpack.c.bf16 %v345_v8, %v344_v7  ;;  %2675 = vmatprep.mubr.msk.f32.mxu1 %vm348_vm0, %v3581_v9  ;;  %v3586_v11 = vld [vmem:[%s3555_s17 + $0x8] sm:$0xff]  ;;  %v346_v12 = vld [vmem:[%s3548_s12 + $0x30] sm:$0xff]  ;;  %v347_v13 = vld [vmem:[%s3548_s12 + $0x38] sm:$0xff]  ;;  %s3266_s27 = smov 96   ;;  %s2481_s29 = sshll.u32 %s3544_s4, 2  ;;  %vm2323_vm6 = vcmask 785408  }
  0xbe   : > { %2855 = vmatpush3.bf16.msra.mxu0 %v2852_v3  ;;  %2857 = vmatprep.subr.bf16.mxu1 %v2856_v6  ;;  %v3591_v14 = vld [vmem:[%s3555_s17 + $0x20] sm:$0xff]  ;;  %v2864_v15 = vpack.c.bf16 %v347_v13, %v346_v12  ;;  %v339_v17 = vld [vmem:[#allocation7 + $0x8] sm:$0xff]  ;;  %v3594_v18 = vld [vmem:[%s3555_s17 + $0x18] sm:$0xff]  ;;  %s2547_s15 = sshll.u32 %s3319_s22, 6  ;;  %s327_s9 = scalar_lea.vmem [#allocation11], %s2481_s29 }
  0xbf   : > { %2861 = vmatprep.subr.bf16.mxu0 %v2860_v10  ;;  %2859 = vmatpush3.bf16.msra.mxu1 %v2856_v6  ;;  %v338_v16 = vld [vmem:[#allocation7] sm:$0xff]  ;;  %v3599_v20 = vld [vmem:[%s3555_s17 + $0x30] sm:$0xff]  ;;  %v3604_v21 = vld [vmem:[%s3555_s17 + $0x28] sm:$0xff]  ;;  %s2340_s23 = sshll.u32 %s327_s9, 4  ;;  %s3750_s8 = scalar_lea.hbm %s3799_s5, %s2547_s15  ;;  %s3752_s23 = int_to_ptr.vmem [resolvable:$true] %s2340_s23 }
  0xc0   : > { %v2868_v19 = vpack.c.bf16 %v339_v17, %v338_v16  ;;  %2865 = vmatprep.subr.bf16.mxu1 %v2864_v15  ;;  %v3611_v22 = vld [vmem:[%s3555_s17 + $0x38] sm:$0xff]  ;;  %v847_v31 = vld [vmem:[#allocation8] sm:$0xff]  ;;  %v849_v33 = vld [vmem:[#allocation8 + $0x10] sm:$0xff]  ;;  %s2327_s22 = scalar_lea.sflag [#allocation4], %s3544_s4  ;;  %s3177_s13 = scalar_lea.vmem %s3752_s23, 64 }
  0xc1   : > { %2669 = vmatmul.mubr.msk.f32.vlgmr.msra.gmra.mrb[0].mxu0 %vm348_vm0, %v3586_v11  ;;  %v848_v32 = vld [vmem:[#allocation8 + $0x8] sm:$0xff]  ;;  %v850_v35 = vld [vmem:[#allocation8 + $0x18] sm:$0xff]  ;;  %p3178_p2 = scmp.ne.s32.totalorder %s3752_s23, %s3177_s13  ;;  %s3267_s16 = smov [#allocation11]  }
  0xc2   : > { %2863 = vmatpush3.bf16.msra.mxu0 %v2860_v10  ;;  %2682 = vmatprep.mubr.msk.f32.mxu0 %vm348_vm0, %v3591_v14  ;;  %v2888_v34 = vpack.c.bf16 %v848_v32, %v847_v31  ;;  %v2892_v36 = vpack.c.bf16 %v850_v35, %v849_v33  ;;  %s3181_s0 = sshll.u32 %s3267_s16, 4  ;;  %s3182_s0 = int_to_ptr.vmem [resolvable:$false] %s3181_s0 }
  0xc3   : > { %2676 = vmatmul.mubr.msk.f32.vlgmr.msra.gmra.mrb[0].mxu1 %vm348_vm0, %v3594_v18  ;;  %2869 = vmatprep.subr.bf16.mxu0 %v2868_v19  ;;  %p3179_p4 = pnand %p3178_p2, %p3452_p5  ;;  %s3183_s11 = scalar_lea.vmem %s3182_s0, 128 }
  0xc4   : > { %2867 = vmatpush3.bf16.msra.mxu1 %v2864_v15  ;;  %2689 = vmatprep.mubr.msk.f32.mxu1 %vm348_vm0, %v3599_v20  ;;  %p3184_p8 = scmp.lt.s32.totalorder %s3752_s23, %s3182_s0  ;;  %p3185_p6 = scmp.lt.s32.totalorder %s3183_s11, %s3177_s13 }
  0xc5   : > { %2683 = vmatmul.mubr.msk.f32.vlgmr.msra.gmra.mrb[2].mxu0 %vm348_vm0, %v3604_v21  ;;  %2944 = vmatprep.subr.bf16.mxu1 %v2868_v19  ;;  %p3180_p0 = pneg %p3179_p4 }
  0xc6   : > { %2871 = vmatpush3.bf16.msra.mxu0 %v2868_v19  ;;  %p3186_p10 = por %p3185_p6, %p3184_p8 }
  0xc7   : > { %2690 = vmatmul.mubr.msk.f32.vlgmr.msra.gmra.mrb[2].mxu1 %vm348_vm0, %v3611_v22  ;;  %2889 = vmatprep.subr.bf16.mxu0 %v2888_v34 }
  0xc8   : > { %2945 = vmatpush3.bf16.msra.mxu1 %v2868_v19  ;;  %p3187_p3 = pnand %p3186_p10, %p3180_p0 }
 0x194   : > { %v2670_v23 = vpop.f32.mrb[0].mxu0 }
 0x195   : > { %v421_v24 = vpop.f32.mrb[1].mxu0 }
 0x196   : > { %2696 = vmatprep.mubr.msk.f32.mxu0 %vm348_vm0, %v421_v24  ;;  %v2677_v25 = vpop.f32.mrb[0].mxu1 }
 0x197   : > { %2697 = vmatmul.mubr.msk.f32.vlgmr.msra.gmra.mrb[4].mxu0 %vm348_vm0, %v2670_v23  ;;  %v502_v26 = vpop.f32.mrb[1].mxu1 }
 0x198   : > { %v2684_v27 = vpop.f32.mrb[2].mxu0  ;;  %2699 = vmatprep.mubr.msk.f32.mxu0 %vm348_vm0, %v502_v26  ;;  %2891 = vmatpush3.bf16.msra.mxu0 %v2888_v34 }
 0x199   : > { %v583_v28 = vpop.f32.mrb[3].mxu0  ;;  %2893 = vmatprep.subr.bf16.mxu0 %v2892_v36 }
 0x19a   : > { %2702 = vmatprep.mubr.msk.f32.mxu1 %vm348_vm0, %v583_v28  ;;  %v2691_v29 = vpop.f32.mrb[2].mxu1 }
 0x19b   : > { %2700 = vmatmul.mubr.msk.f32.gmra.mrb[6].mxu0 %vm348_vm0, %v2677_v25  ;;  %2703 = vmatmul.mubr.msk.f32.vlgmr.msra.gmra.mrb[4].mxu1 %vm348_vm0, %v2684_v27  ;;  %v664_v30 = vpop.f32.mrb[3].mxu1 }
 0x19c   : > { %2705 = vmatprep.mubr.msk.f32.mxu1 %vm348_vm0, %v664_v30  ;;  %2895 = vmatpush3.bf16.msra.mxu0 %v2892_v36 }
 0x19f   : > { %2706 = vmatmul.mubr.msk.f32.gmra.mrb[6].mxu1 %vm348_vm0, %v2691_v29 }
 0x1a0   : > { %2712 = vmatprep.mubr.msk.f32.mxu1 %vm348_vm0, %v3572_v2 }
 0x26a   : > { %v2698_v37 = vpop.f32.mrb[4].mxu0 }
 0x26b   : > { %v803_v38 = vmax.f32 %v2698_v37, 0.0  ;;  %v763_v39 = vpop.f32.mrb[5].mxu0 }
 0x26c   : > { %v802_v40 = vmax.f32 %v763_v39, 0.0 }
 0x26d   : > { %v812_v41 = vsel %vm810_vm1, %v803_v38, -inf }
 0x26e   : > { %v811_v42 = vsel %vm810_vm1, %v802_v40, -inf  ;;  %v2872_v43 = vpack.c.bf16 %v803_v38, %v802_v40  ;;  %v2701_v44 = vpop.f32.mrb[6].mxu0  ;;  %v2704_v45 = vpop.f32.mrb[4].mxu1 }
 0x26f   : > { %v813_v46 = vmax.f32 %v811_v42, %v812_v41  ;;  %v805_v47 = vmax.f32 %v2701_v44, 0.0  ;;  %v807_v48 = vmax.f32 %v2704_v45, 0.0  ;;  %v773_v49 = vpop.f32.mrb[7].mxu0  ;;  %v783_v50 = vpop.f32.mrb[5].mxu1 }
 0x270   : > { %v804_v51 = vmax.f32 %v773_v49, 0.0  ;;  %v806_v52 = vmax.f32 %v783_v50, 0.0  ;;  %2873 = vmatprep.subr.bf16.mxu1 %v2872_v43 }
 0x271   : > { %v814_v53 = vrot.slane %v813_v46, 4  ;;  %v821_v54 = vsel %vm810_vm1, %v805_v47, -inf  ;;  %v830_v55 = vsel %vm810_vm1, %v807_v48, -inf  ;;  %2875 = vmatpush3.bf16.msra.mxu1 %v2872_v43 }
 0x272   : > { %v820_v56 = vsel %vm810_vm1, %v804_v51, -inf  ;;  %v2876_v57 = vpack.c.bf16 %v805_v47, %v804_v51  ;;  %v829_v58 = vsel %vm810_vm1, %v806_v52, -inf  ;;  %v2880_v59 = vpack.c.bf16 %v807_v48, %v806_v52  ;;  %v2707_v60 = vpop.f32.mrb[6].mxu1 }
 0x273   : > { %v815_v61 = vmax.f32 %v813_v46, %v814_v53  ;;  %v822_v62 = vmax.f32 %v820_v56, %v821_v54  ;;  %v831_v63 = vmax.f32 %v829_v58, %v830_v55  ;;  %v809_v0 = vmax.f32 %v2707_v60, 0.0  ;;  %v793_v1 = vpop.f32.mrb[7].mxu1 }
 0x274   : > { %v808_v3 = vmax.f32 %v793_v1, 0.0  ;;  %2713 = vmatmul.mubr.msk.f32.vlgmr.msra.gmra.mrb[8].mxu1 %vm348_vm0, %v3586_v11  ;;  %2877 = vmatprep.subr.bf16.mxu1 %v2876_v57 }
 0x275   : > { %v816_v4 = vrot.slane %v815_v61, 2  ;;  %v823_v5 = vrot.slane %v822_v62, 4  ;;  %v832_v6 = vrot.slane %v831_v63, 4  ;;  %v839_v7 = vsel %vm810_vm1, %v809_v0, -inf  ;;  %2879 = vmatpush3.bf16.msra.mxu1 %v2876_v57  ;;  %2719 = vmatprep.mubr.msk.f32.mxu1 %vm348_vm0, %v3581_v9 }
 0x276   : > { %v838_v8 = vsel %vm810_vm1, %v808_v3, -inf  ;;  %v2884_v10 = vpack.c.bf16 %v809_v0, %v808_v3  ;;  %2881 = vmatprep.subr.bf16.mxu1 %v2880_v59 }
 0x277   : > { %v817_v12 = vmax.f32 %v815_v61, %v816_v4  ;;  %v824_v13 = vmax.f32 %v822_v62, %v823_v5  ;;  %v833_v15 = vmax.f32 %v831_v63, %v832_v6  ;;  %v840_v16 = vmax.f32 %v838_v8, %v839_v7 }
 0x278   : > { %2720 = vmatmul.mubr.msk.f32.vlgmr.msra.gmra.mrb[10].mxu1 %vm348_vm0, %v3594_v18 }
 0x279   : > { %v825_v17 = vrot.slane %v824_v13, 2  ;;  %v834_v19 = vrot.slane %v833_v15, 2  ;;  %v841_v23 = vrot.slane %v840_v16, 4  ;;  %2883 = vmatpush3.bf16.msra.mxu1 %v2880_v59  ;;  %2726 = vmatprep.mubr.msk.f32.mxu1 %vm348_vm0, %v3591_v14  ;;  %v818_v24 = vrot.slane %v817_v12, 1 }
 0x27a   : > { %2885 = vmatprep.subr.bf16.mxu1 %v2884_v10 }
 0x27b   : > { %v826_v25 = vmax.f32 %v824_v13, %v825_v17  ;;  %v835_v26 = vmax.f32 %v833_v15, %v834_v19  ;;  %v842_v27 = vmax.f32 %v840_v16, %v841_v23  ;;  %v819_v31 = vmax.f32 %v817_v12, %v818_v24 }
 0x27c   : > { %2727 = vmatmul.mubr.msk.f32.vlgmr.msra.gmra.mrb[12].mxu1 %vm348_vm0, %v3604_v21 }
 0x27d   : > { %v827_v28 = vrot.slane %v826_v25, 1  ;;  %v836_v29 = vrot.slane %v835_v26, 1  ;;  %v843_v30 = vrot.slane %v842_v27, 2  ;;  %2887 = vmatpush3.bf16.msra.mxu1 %v2884_v10  ;;  %2733 = vmatprep.mubr.msk.f32.mxu1 %vm348_vm0, %v3599_v20 }
 0x27f   : > { %v828_v32 = vmax.f32 %v826_v25, %v827_v28  ;;  %v837_v33 = vmax.f32 %v835_v26, %v836_v29  ;;  %v844_v34 = vmax.f32 %v842_v27, %v843_v30 }
 0x280   : > { %2734 = vmatmul.mubr.msk.f32.vlgmr.msra.gmra.mrb[14].mxu1 %vm348_vm0, %v3611_v22 }
 0x281   : > { %v845_v35 = vrot.slane %v844_v34, 1  ;;  %2760 = vmatprep.mubr.msk.f32.mxu1 %vm348_vm0, %v3572_v2  ;;  %v2284_v36 = vsel %vm2283_vm2, %v828_v32, %v819_v31 }
 0x282   : > { %v2286_v37 = vsel %vm2285_vm3, %v837_v33, %v2284_v36 }
 0x283   : > { %v846_v38 = vmax.f32 %v844_v34, %v845_v35 }
 0x285   : > { %v3654_v39 = vsel %vm2287_vm4, %v846_v38, %v2286_v37  ;;  %v1325_v38 = vld [vmem:[#allocation8 + $0x20] sm:$0xff] }
 0x347   : > { %v2714_v40 = vpop.f32.mrb[8].mxu1 }
 0x348   : > { %v917_v41 = vpop.f32.mrb[9].mxu1 }
 0x349   : > { %2744 = vmatprep.mubr.msk.f32.mxu0 %vm810_vm1, %v917_v41  ;;  %v1327_v41 = vld [vmem:[#allocation8 + $0x30] sm:$0xff] }
 0x34a   : > { %2745 = vmatmul.mubr.msk.f32.vlgmr.msra.gmra.mrb[8].mxu0 %vm810_vm1, %v2714_v40  ;;  %v1326_v40 = vld [vmem:[#allocation8 + $0x28] sm:$0xff] }
 0x34b   : > { %v2721_v42 = vpop.f32.mrb[10].mxu1 }
 0x34c   : > { %v992_v43 = vpop.f32.mrb[11].mxu1 }
 0x34d   : > { %2747 = vmatprep.mubr.msk.f32.mxu0 %vm810_vm1, %v992_v43  ;;  %v2912_v43 = vpack.c.bf16 %v1326_v40, %v1325_v38 }
 0x34e   : > { %2748 = vmatmul.mubr.msk.f32.gmra.mrb[10].mxu0 %vm810_vm1, %v2721_v42 }
 0x34f   : > { %v2728_v44 = vpop.f32.mrb[12].mxu1  ;;  %2913 = vmatprep.subr.bf16.mxu0 %v2912_v43 }
 0x350   : > { %v1067_v45 = vpop.f32.mrb[13].mxu1  ;;  %2915 = vmatpush3.bf16.msra.mxu0 %v2912_v43 }
 0x351   : > { %2750 = vmatprep.mubr.msk.f32.mxu0 %vm810_vm1, %v1067_v45 }
 0x352   : > { %2751 = vmatmul.mubr.msk.f32.gmra.mrb[12].mxu0 %vm810_vm1, %v2728_v44  ;;  %v1328_v44 = vld [vmem:[#allocation8 + $0x38] sm:$0xff] }
 0x353   : > { %v2735_v46 = vpop.f32.mrb[14].mxu1 }
 0x354   : > { %v1142_v47 = vpop.f32.mrb[15].mxu1 }
 0x355   : > { %2753 = vmatprep.mubr.msk.f32.mxu0 %vm810_vm1, %v1142_v47 }
 0x356   : > { %2754 = vmatmul.mubr.msk.f32.gmra.mrb[14].mxu0 %vm810_vm1, %v2735_v46 }
 0x41d   : > { %v2746_v48 = vpop.f32.mrb[8].mxu0 }
 0x41e   : > { %v1281_v49 = vmax.f32 %v2746_v48, 0.0  ;;  %v1241_v50 = vpop.f32.mrb[9].mxu0  ;;  %v2916_v48 = vpack.c.bf16 %v1328_v44, %v1327_v41 }
 0x41f   : > { %v1280_v51 = vmax.f32 %v1241_v50, 0.0 }
 0x420   : > { %v1289_v52 = vsel %vm810_vm1, %v1281_v49, -inf  ;;  %2917 = vmatprep.subr.bf16.mxu0 %v2916_v48 }
 0x421   : > { %v1288_v53 = vsel %vm810_vm1, %v1280_v51, -inf  ;;  %v2896_v54 = vpack.c.bf16 %v1281_v49, %v1280_v51  ;;  %v2749_v55 = vpop.f32.mrb[10].mxu0  ;;  %2919 = vmatpush3.bf16.msra.mxu0 %v2916_v48 }
 0x422   : > { %v1290_v56 = vmax.f32 %v1288_v53, %v1289_v52  ;;  %v1283_v57 = vmax.f32 %v2749_v55, 0.0  ;;  %v1251_v58 = vpop.f32.mrb[11].mxu0 }
 0x423   : > { %v1282_v59 = vmax.f32 %v1251_v58, 0.0  ;;  %2897 = vmatprep.subr.bf16.mxu1 %v2896_v54 }
 0x424   : > { %v1291_v60 = vrot.slane %v1290_v56, 4  ;;  %v1298_v61 = vsel %vm810_vm1, %v1283_v57, -inf  ;;  %2899 = vmatpush3.bf16.msra.mxu1 %v2896_v54 }
 0x425   : > { %v1297_v62 = vsel %vm810_vm1, %v1282_v59, -inf  ;;  %v2900_v63 = vpack.c.bf16 %v1283_v57, %v1282_v59  ;;  %v2752_v0 = vpop.f32.mrb[12].mxu0 }
 0x426   : > { %v1292_v1 = vmax.f32 %v1290_v56, %v1291_v60  ;;  %v1299_v3 = vmax.f32 %v1297_v62, %v1298_v61  ;;  %v1285_v4 = vmax.f32 %v2752_v0, 0.0  ;;  %v1261_v5 = vpop.f32.mrb[13].mxu0 }
 0x427   : > { %v1284_v6 = vmax.f32 %v1261_v5, 0.0  ;;  %2761 = vmatmul.mubr.msk.f32.vlgmr.msra.gmra.mrb[16].mxu1 %vm348_vm0, %v3586_v11  ;;  %2901 = vmatprep.subr.bf16.mxu1 %v2900_v63 }
 0x428   : > { %v1293_v7 = vrot.slane %v1292_v1, 2  ;;  %v1300_v8 = vrot.slane %v1299_v3, 4  ;;  %v1307_v10 = vsel %vm810_vm1, %v1285_v4, -inf  ;;  %2903 = vmatpush3.bf16.msra.mxu1 %v2900_v63  ;;  %2767 = vmatprep.mubr.msk.f32.mxu1 %vm348_vm0, %v3581_v9 }
 0x429   : > { %v1306_v12 = vsel %vm810_vm1, %v1284_v6, -inf  ;;  %v2904_v13 = vpack.c.bf16 %v1285_v4, %v1284_v6  ;;  %v2755_v15 = vpop.f32.mrb[14].mxu0 }
 0x42a   : > { %v1294_v16 = vmax.f32 %v1292_v1, %v1293_v7  ;;  %v1301_v17 = vmax.f32 %v1299_v3, %v1300_v8  ;;  %v1308_v19 = vmax.f32 %v1306_v12, %v1307_v10  ;;  %v1287_v23 = vmax.f32 %v2755_v15, 0.0  ;;  %v1271_v24 = vpop.f32.mrb[15].mxu0 }
 0x42b   : > { %v1286_v25 = vmax.f32 %v1271_v24, 0.0  ;;  %2768 = vmatmul.mubr.msk.f32.vlgmr.msra.gmra.mrb[18].mxu1 %vm348_vm0, %v3594_v18  ;;  %2905 = vmatprep.subr.bf16.mxu1 %v2904_v13 }
 0x42c   : > { %v1302_v26 = vrot.slane %v1301_v17, 2  ;;  %v1309_v27 = vrot.slane %v1308_v19, 4  ;;  %v1316_v28 = vsel %vm810_vm1, %v1287_v23, -inf  ;;  %2907 = vmatpush3.bf16.msra.mxu1 %v2904_v13  ;;  %2774 = vmatprep.mubr.msk.f32.mxu1 %vm348_vm0, %v3591_v14  ;;  %v1295_v29 = vrot.slane %v1294_v16, 1 }
 0x42d   : > { %v1315_v30 = vsel %vm810_vm1, %v1286_v25, -inf  ;;  %v2908_v31 = vpack.c.bf16 %v1287_v23, %v1286_v25 }
 0x42e   : > { %v1303_v32 = vmax.f32 %v1301_v17, %v1302_v26  ;;  %v1310_v33 = vmax.f32 %v1308_v19, %v1309_v27  ;;  %v1317_v34 = vmax.f32 %v1315_v30, %v1316_v28  ;;  %v1296_v42 = vmax.f32 %v1294_v16, %v1295_v29 }
 0x42f   : > { %2775 = vmatmul.mubr.msk.f32.vlgmr.msra.gmra.mrb[20].mxu1 %vm348_vm0, %v3604_v21  ;;  %2909 = vmatprep.subr.bf16.mxu1 %v2908_v31 }
 0x430   : > { %v1304_v35 = vrot.slane %v1303_v32, 1  ;;  %v1311_v36 = vrot.slane %v1310_v33, 2  ;;  %v1318_v37 = vrot.slane %v1317_v34, 4  ;;  %2911 = vmatpush3.bf16.msra.mxu1 %v2908_v31  ;;  %2781 = vmatprep.mubr.msk.f32.mxu1 %vm348_vm0, %v3599_v20 }
 0x432   : > { %v1312_v45 = vmax.f32 %v1310_v33, %v1311_v36  ;;  %v1319_v46 = vmax.f32 %v1317_v34, %v1318_v37  ;;  %v1305_v47 = vmax.f32 %v1303_v32, %v1304_v35 }
 0x433   : > { %2782 = vmatmul.mubr.msk.f32.vlgmr.msra.gmra.mrb[22].mxu1 %vm348_vm0, %v3611_v22 }
 0x434   : > { %v1320_v49 = vrot.slane %v1319_v46, 2  ;;  %v1313_v50 = vrot.slane %v1312_v45, 1  ;;  %v2294_v51 = vsel %vm2283_vm2, %v1305_v47, %v1296_v42  ;;  %2808 = vmatprep.mubr.msk.f32.mxu1 %vm348_vm0, %v3572_v2 }
 0x436   : > { %v1314_v52 = vmax.f32 %v1312_v45, %v1313_v50  ;;  %v1321_v53 = vmax.f32 %v1319_v46, %v1320_v49 }
 0x438   : > { %v1322_v54 = vrot.slane %v1321_v53, 1  ;;  %v2295_v55 = vsel %vm2285_vm3, %v1314_v52, %v2294_v51 }
 0x43a   : > { %v1323_v56 = vmax.f32 %v1321_v53, %v1322_v54  ;;  %v1802_v53 = vld [vmem:[#allocation10] sm:$0xff]  ;;  %v1804_v54 = vld [vmem:[#allocation10 + $0x10] sm:$0xff] }
 0x43c   : > { %v2296_v57 = vsel %vm2287_vm4, %v1323_v56, %v2295_v55 }
 0x43d   : > { %2297 = vrot.lane.b32.xlu0 %v2296_v57, %s3264_s24  ;;  %v1805_v57 = vld [vmem:[#allocation10 + $0x18] sm:$0xff] }
 0x4fa   : > { %v2762_v58 = vpop.f32.mrb[16].mxu1 }
 0x4fb   : > { %v1395_v59 = vpop.f32.mrb[17].mxu1 }
 0x4fc   : > { %2792 = vmatprep.mubr.msk.f32.mxu0 %vm810_vm1, %v1395_v59 }
 0x4fd   : > { %2793 = vmatmul.mubr.msk.f32.vlgmr.msra.gmra.mrb[16].mxu0 %vm810_vm1, %v2762_v58 }
 0x4fe   : > { %v2769_v60 = vpop.f32.mrb[18].mxu1 }
 0x4ff   : > { %v1470_v2 = vpop.f32.mrb[19].mxu1 }
 0x500   : > { %2795 = vmatprep.mubr.msk.f32.mxu0 %vm810_vm1, %v1470_v2  ;;  %v2940_v2 = vpack.c.bf16 %v1805_v57, %v1804_v54 }
 0x501   : > { %2796 = vmatmul.mubr.msk.f32.gmra.mrb[18].mxu0 %vm810_vm1, %v2769_v60 }
 0x502   : > { %v2776_v61 = vpop.f32.mrb[20].mxu1 }
 0x503   : > { %v1545_v62 = vpop.f32.mrb[21].mxu1 }
 0x504   : > { %2798 = vmatprep.mubr.msk.f32.mxu0 %vm810_vm1, %v1545_v62 }
 0x505   : > { %2799 = vmatmul.mubr.msk.f32.gmra.mrb[20].mxu0 %vm810_vm1, %v2776_v61 }
 0x506   : > { %v2783_v63 = vpop.f32.mrb[22].mxu1 }
 0x507   : > { %v1620_v0 = vpop.f32.mrb[23].mxu1 }
 0x508   : > { %2801 = vmatprep.mubr.msk.f32.mxu0 %vm810_vm1, %v1620_v0 }
 0x509   : > { %2802 = vmatmul.mubr.msk.f32.gmra.mrb[22].mxu0 %vm810_vm1, %v2783_v63 }
 0x5d0   : > { %v2794_v1 = vpop.f32.mrb[16].mxu0 }
 0x5d1   : > { %v1759_v3 = vmax.f32 %v2794_v1, 0.0  ;;  %v1719_v4 = vpop.f32.mrb[17].mxu0 }
 0x5d2   : > { %v1758_v5 = vmax.f32 %v1719_v4, 0.0 }
 0x5d3   : > { %v1767_v6 = vsel %vm810_vm1, %v1759_v3, -inf }
 0x5d4   : > { %v1766_v7 = vsel %vm810_vm1, %v1758_v5, -inf  ;;  %v2920_v8 = vpack.c.bf16 %v1759_v3, %v1758_v5  ;;  %v2797_v10 = vpop.f32.mrb[18].mxu0 }
 0x5d5   : > { %v1768_v12 = vmax.f32 %v1766_v7, %v1767_v6  ;;  %v1761_v13 = vmax.f32 %v2797_v10, 0.0  ;;  %v1729_v15 = vpop.f32.mrb[19].mxu0 }
 0x5d6   : > { %v1760_v16 = vmax.f32 %v1729_v15, 0.0  ;;  %2921 = vmatprep.subr.bf16.mxu1 %v2920_v8 }
 0x5d7   : > { %v1769_v17 = vrot.slane %v1768_v12, 4  ;;  %v1776_v19 = vsel %vm810_vm1, %v1761_v13, -inf  ;;  %2923 = vmatpush3.bf16.msra.mxu1 %v2920_v8 }
 0x5d8   : > { %v1775_v23 = vsel %vm810_vm1, %v1760_v16, -inf  ;;  %v2924_v24 = vpack.c.bf16 %v1761_v13, %v1760_v16  ;;  %v2800_v25 = vpop.f32.mrb[20].mxu0 }
 0x5d9   : > { %v1770_v26 = vmax.f32 %v1768_v12, %v1769_v17  ;;  %v1777_v27 = vmax.f32 %v1775_v23, %v1776_v19  ;;  %v1763_v28 = vmax.f32 %v2800_v25, 0.0  ;;  %v1739_v29 = vpop.f32.mrb[21].mxu0 }
 0x5da   : > { %v1762_v30 = vmax.f32 %v1739_v29, 0.0  ;;  %2809 = vmatmul.mubr.msk.f32.vlgmr.msra.gmra.mrb[24].mxu1 %vm348_vm0, %v3586_v11  ;;  %2925 = vmatprep.subr.bf16.mxu1 %v2924_v24 }
 0x5db   : > { %v1771_v31 = vrot.slane %v1770_v26, 2  ;;  %v1778_v32 = vrot.slane %v1777_v27, 4  ;;  %v1785_v33 = vsel %vm810_vm1, %v1763_v28, -inf  ;;  %2927 = vmatpush3.bf16.msra.mxu1 %v2924_v24  ;;  %2815 = vmatprep.mubr.msk.f32.mxu1 %vm348_vm0, %v3581_v9 }
 0x5dc   : > { %v1784_v34 = vsel %vm810_vm1, %v1762_v30, -inf  ;;  %v2928_v35 = vpack.c.bf16 %v1763_v28, %v1762_v30  ;;  %v2803_v36 = vpop.f32.mrb[22].mxu0 }
 0x5dd   : > { %v1772_v37 = vmax.f32 %v1770_v26, %v1771_v31  ;;  %v1779_v38 = vmax.f32 %v1777_v27, %v1778_v32  ;;  %v1786_v40 = vmax.f32 %v1784_v34, %v1785_v33  ;;  %v1765_v41 = vmax.f32 %v2803_v36, 0.0  ;;  %v1749_v42 = vpop.f32.mrb[23].mxu0 }
 0x5de   : > { %v1764_v43 = vmax.f32 %v1749_v42, 0.0  ;;  %2816 = vmatmul.mubr.msk.f32.vlgmr.msra.gmra.mrb[26].mxu1 %vm348_vm0, %v3594_v18  ;;  %2929 = vmatprep.subr.bf16.mxu1 %v2928_v35 }
 0x5df   : > { %v1780_v11 = vrot.slane %v1779_v38, 2  ;;  %v1787_v44 = vrot.slane %v1786_v40, 4  ;;  %v1794_v45 = vsel %vm810_vm1, %v1765_v41, -inf  ;;  %2931 = vmatpush3.bf16.msra.mxu1 %v2928_v35  ;;  %2822 = vmatprep.mubr.msk.f32.mxu1 %vm348_vm0, %v3591_v14  ;;  %v1773_v9 = vrot.slane %v1772_v37, 1  ;;  %v1803_v14 = vld [vmem:[#allocation10 + $0x8] sm:$0xff] }
 0x5e0   : > { %v1793_v46 = vsel %vm810_vm1, %v1764_v43, -inf  ;;  %v2932_v47 = vpack.c.bf16 %v1765_v41, %v1764_v43  ;;  %v2936_v56 = vpack.c.bf16 %v1803_v14, %v1802_v53 }
 0x5e1   : > { %v1781_v48 = vmax.f32 %v1779_v38, %v1780_v11  ;;  %v1788_v49 = vmax.f32 %v1786_v40, %v1787_v44  ;;  %v1795_v50 = vmax.f32 %v1793_v46, %v1794_v45  ;;  %v1774_v55 = vmax.f32 %v1772_v37, %v1773_v9 }
 0x5e2   : > { %2823 = vmatmul.mubr.msk.f32.vlgmr.msra.gmra.mrb[28].mxu1 %vm348_vm0, %v3604_v21  ;;  %2933 = vmatprep.subr.bf16.mxu1 %v2932_v47 }
 0x5e3   : > { %v1782_v18 = vrot.slane %v1781_v48, 1  ;;  %v1789_v51 = vrot.slane %v1788_v49, 2  ;;  %v1796_v52 = vrot.slane %v1795_v50, 4  ;;  %2935 = vmatpush3.bf16.msra.mxu1 %v2932_v47  ;;  %2829 = vmatprep.mubr.msk.f32.mxu1 %vm348_vm0, %v3599_v20 }
 0x5e4   : > { %2937 = vmatprep.subr.bf16.mxu0 %v2936_v56 }
 0x5e5   : > { %v1783_v58 = vmax.f32 %v1781_v48, %v1782_v18  ;;  %v1790_v59 = vmax.f32 %v1788_v49, %v1789_v51  ;;  %v1797_v60 = vmax.f32 %v1795_v50, %v1796_v52  ;;  %2939 = vmatpush3.bf16.msra.mxu0 %v2936_v56 }
 0x5e6   : > { %2830 = vmatmul.mubr.msk.f32.vlgmr.msra.gmra.mrb[30].mxu1 %vm348_vm0, %v3611_v22  ;;  %2941 = vmatprep.subr.bf16.mxu0 %v2940_v2 }
 0x5e7   : > { %v1791_v21 = vrot.slane %v1790_v59, 1  ;;  %v1798_v61 = vrot.slane %v1797_v60, 2  ;;  %v2304_v62 = vsel %vm2283_vm2, %v1783_v58, %v1774_v55 }
 0x5e9   : > { %v1799_v20 = vmax.f32 %v1797_v60, %v1798_v61  ;;  %v1792_v63 = vmax.f32 %v1790_v59, %v1791_v21  ;;  %2943 = vmatpush3.bf16.msra.mxu0 %v2940_v2 }
 0x5eb   : > { %v1800_v0 = vrot.slane %v1799_v20, 1  ;;  %v2305_v1 = vsel %vm2285_vm3, %v1792_v63, %v2304_v62 }
 0x5ed   : > { %v1801_v3 = vmax.f32 %v1799_v20, %v1800_v0 }
 0x5ef   : > { %v2306_v4 = vsel %vm2287_vm4, %v1801_v3, %v2305_v1 }
 0x5f0   : > { %2307 = vrot.lane.b32.xlu0 %v2306_v4, %s3265_s3 }
 0x6ad   : > { %v2810_v5 = vpop.f32.mrb[24].mxu1 }
 0x6ae   : > { %v1872_v22 = vpop.f32.mrb[25].mxu1 }
 0x6af   : > { %2840 = vmatprep.mubr.msk.f32.mxu0 %vm810_vm1, %v1872_v22 }
 0x6b0   : > { %2841 = vmatmul.mubr.msk.f32.vlgmr.msra.gmra.mrb[24].mxu0 %vm810_vm1, %v2810_v5  ;;  %v2298_v5 = vpop.permute.xlu0 %2297 }
 0x6b1   : > { %v2817_v6 = vpop.f32.mrb[26].mxu1 }
 0x6b2   : > { %v1947_v7 = vpop.f32.mrb[27].mxu1 }
 0x6b3   : > { %2843 = vmatprep.mubr.msk.f32.mxu0 %vm810_vm1, %v1947_v7 }
 0x6b4   : > { %2844 = vmatmul.mubr.msk.f32.gmra.mrb[26].mxu0 %vm810_vm1, %v2817_v6  ;;  %v2308_v22 = vpop.permute.xlu0 %2307  ;;  %v2320_v6 = vsel %vm810_vm1, %v3654_v39, %v2298_v5 }
 0x6b5   : > { %v2824_v8 = vpop.f32.mrb[28].mxu1  ;;  %v2322_v7 = vsel %vm2321_vm5, %v2320_v6, %v2308_v22 }
 0x6b6   : > { %v2022_v10 = vpop.f32.mrb[29].mxu1 }
 0x6b7   : > { %2846 = vmatprep.mubr.msk.f32.mxu0 %vm810_vm1, %v2022_v10 }
 0x6b8   : > { %2847 = vmatmul.mubr.msk.f32.gmra.mrb[28].mxu0 %vm810_vm1, %v2824_v8 }
 0x6b9   : > { %v2831_v12 = vpop.f32.mrb[30].mxu1 }
 0x6ba   : > { %v2097_v13 = vpop.f32.mrb[31].mxu1 }
 0x6bb   : > { %2849 = vmatprep.mubr.msk.f32.mxu0 %vm810_vm1, %v2097_v13 }
 0x6bc   : > { %2850 = vmatmul.mubr.msk.f32.gmra.mrb[30].mxu0 %vm810_vm1, %v2831_v12 }
 0x783   : > { %v2842_v15 = vpop.f32.mrb[24].mxu0 }
 0x784   : > { %v2236_v16 = vmax.f32 %v2842_v15, 0.0  ;;  %v2196_v17 = vpop.f32.mrb[25].mxu0 }
 0x785   : > { %v2235_v19 = vmax.f32 %v2196_v17, 0.0 }
 0x786   : > { %v2244_v23 = vsel %vm810_vm1, %v2236_v16, -inf }
 0x787   : > { %v2243_v24 = vsel %vm810_vm1, %v2235_v19, -inf  ;;  %v2845_v25 = vpop.f32.mrb[26].mxu0 }
 0x788   : > { %v2245_v26 = vmax.f32 %v2243_v24, %v2244_v23  ;;  %v2238_v27 = vmax.f32 %v2845_v25, 0.0  ;;  %v2206_v28 = vpop.f32.mrb[27].mxu0 }
 0x789   : > { %v2237_v29 = vmax.f32 %v2206_v28, 0.0 }
 0x78a   : > { %v2246_v30 = vrot.slane %v2245_v26, 4  ;;  %v2253_v31 = vsel %vm810_vm1, %v2238_v27, -inf }
 0x78b   : > { %v2252_v32 = vsel %vm810_vm1, %v2237_v29, -inf  ;;  %v2848_v33 = vpop.f32.mrb[28].mxu0 }
 0x78c   : > { %v2247_v34 = vmax.f32 %v2245_v26, %v2246_v30  ;;  %v2254_v35 = vmax.f32 %v2252_v32, %v2253_v31  ;;  %v2240_v36 = vmax.f32 %v2848_v33, 0.0  ;;  %v2216_v37 = vpop.f32.mrb[29].mxu0 }
 0x78d   : > { %v2239_v38 = vmax.f32 %v2216_v37, 0.0 }
 0x78e   : > { %v2248_v40 = vrot.slane %v2247_v34, 2  ;;  %v2255_v41 = vrot.slane %v2254_v35, 4  ;;  %v2262_v42 = vsel %vm810_vm1, %v2240_v36, -inf }
 0x78f   : > { %v2261_v43 = vsel %vm810_vm1, %v2239_v38, -inf  ;;  %v2851_v11 = vpop.f32.mrb[30].mxu0 }
 0x790   : > { %v2249_v44 = vmax.f32 %v2247_v34, %v2248_v40  ;;  %v2256_v45 = vmax.f32 %v2254_v35, %v2255_v41  ;;  %v2263_v9 = vmax.f32 %v2261_v43, %v2262_v42  ;;  %v2242_v46 = vmax.f32 %v2851_v11, 0.0  ;;  %v2226_v47 = vpop.f32.mrb[31].mxu0 }
 0x791   : > { %v2241_v48 = vmax.f32 %v2226_v47, 0.0 }
 0x792   : > { %v2257_v49 = vrot.slane %v2256_v45, 2  ;;  %v2264_v50 = vrot.slane %v2263_v9, 4  ;;  %v2271_v18 = vsel %vm810_vm1, %v2242_v46, -inf  ;;  %v2250_v52 = vrot.slane %v2249_v44, 1 }
 0x793   : > { %v2270_v51 = vsel %vm810_vm1, %v2241_v48, -inf }
 0x794   : > { %v2258_v53 = vmax.f32 %v2256_v45, %v2257_v49  ;;  %v2265_v14 = vmax.f32 %v2263_v9, %v2264_v50  ;;  %v2272_v54 = vmax.f32 %v2270_v51, %v2271_v18  ;;  %v2251_v60 = vmax.f32 %v2249_v44, %v2250_v52 }
 0x796   : > { %v2259_v55 = vrot.slane %v2258_v53, 1  ;;  %v2266_v56 = vrot.slane %v2265_v14, 2  ;;  %v2273_v57 = vrot.slane %v2272_v54, 4 }
 0x798   : > { %v2267_v58 = vmax.f32 %v2265_v14, %v2266_v56  ;;  %v2274_v59 = vmax.f32 %v2272_v54, %v2273_v57  ;;  %v2260_v2 = vmax.f32 %v2258_v53, %v2259_v55 }
 0x79a   : > { %v2275_v21 = vrot.slane %v2274_v59, 2  ;;  %v2268_v61 = vrot.slane %v2267_v58, 1  ;;  %v2314_v62 = vsel %vm2283_vm2, %v2260_v2, %v2251_v60 }
 0x79c   : > { %v2276_v20 = vmax.f32 %v2274_v59, %v2275_v21  ;;  %v2269_v63 = vmax.f32 %v2267_v58, %v2268_v61 }
 0x79e   : > { %v2277_v0 = vrot.slane %v2276_v20, 1  ;;  %v2315_v1 = vsel %vm2285_vm3, %v2269_v63, %v2314_v62 }
 0x7a0   : > { %v2278_v3 = vmax.f32 %v2276_v20, %v2277_v0 }
 0x7a2   : > { %v2316_v4 = vsel %vm2287_vm4, %v2278_v3, %v2315_v1 }
 0x7a3   : > { %2317 = vrot.lane.b32.xlu1 %v2316_v4, %s3266_s27 }
 0x815   : > { %v2318_v8 = vpop.permute.xlu1 %2317 }
 0x816   : > { %v2324_v10 = vsel %vm2323_vm6, %v2322_v7, %v2318_v8 }
 0x817   : > { %2325 = vst [vmem:[%s327_s9] sm:$0xf] %v2324_v10 }
 0x818   : > { %3190 = shalt.err (!%p3187_p3)
}
 0x819   : > { %s3191_s4 = scalar_lea.hbm %s3750_s8, 64  ;;  %s3195_s6 = scalar_lea.hbm %s3799_s5, 128 }
 0x81a   : > { %p3192_p9 = scmp.ne.s32.totalorder %s3750_s8, %s3191_s4  ;;  %p3196_p7 = scmp.lt.u32.totalorder %s3750_s8, %s3799_s5 }
 0x81b   : > { %p3197_p12 = scmp.lt.u32.totalorder %s3195_s6, %s3191_s4  ;;  %p3199_p2 = scmp.lt.u32.totalorder %s3191_s4, %s3750_s8 }
 0x81c   : > { %p3193_p13 = pnand %p3192_p9, %p3452_p5 }
 0x81d   : > { %p3198_p1 = por %p3197_p12, %p3196_p7 }
 0x81e   : > { %p3194_p11 = pneg %p3193_p13 }
 0x81f   : > { %p3200_p4 = por %p3199_p2, %p3198_p1 }
 0x821   : > { %p3201_p0 = pnand %p3200_p4, %p3194_p11 }
 0x823   : > { %3204 = shalt.err (!%p3201_p0)
}
 0x824   : > { %2962 = dma.vmem_to_hbm [thread:$0]  (%p3452_p5), %s3752_s23, 64, %s3750_s8, %s2327_s22  }
 0x825 PF: > { %s2352_s24 = sand.u32 1, %s3243_s18   ;;  %p3831_p8 = scmp.ne.s32.totalorder %s3812_s25, 0 }
 0x826   : > { %p3832_p6 = scmp.ge.s32.totalorder %s3255_s21, 2  ;;  %s2353_s3 = scalar_lea.sflag [#allocation4], %s2352_s24 }
 0x828   : > { %p2982_p10 = pnand %p3832_p6, %p3831_p8 }
 0x82a   : > { %3238 = dma.done.wait (!%p2982_p10), %s2353_s3, 64  }
 0x82b   : > { %3240 = vsyncadd (!%p2982_p10), %s2353_s3, 4294967232  ;;  %p22_p3 = scmp.ge.s32.totalorder %s3438_s14, 4   ;;  %s3833_s18 = smov %s3247_s19 }
 0x82c   : > { %s3834_s19 = smov %s3251_s20  ;;  %s3835_s20 = smov %s3448_s30 }
 0x82d   : > { %s3836_s21 = smov %s3438_s14  ;;  %24 = sbr.rel (!%p22_p3) target bundleno = 13 (0xd), region = 111 }
 0x834   :  { %2358 = vsyncpa [#allocation3], 1 }
 0x835   :  { %2360 = vsyncpa [#allocation3 + $0x1], 1 }
 0x836   :  { %2361 = vsyncpa [#allocation6], 1 }
 0x837   :  { %2363 = vsyncpa [#allocation6 + $0x1], 1 }
 0x838   :  { %2364 = vsyncpa [#allocation9], 1 }
 0x839   :  { %2365 = vsyncpa [#allocation4], 1 }
 0x83a   :  { %2367 = vsyncpa [#allocation4 + $0x1], 1 }

</bundles_post_ra>
